<compile_context>
chip_gen: v6e
topology: v6e:2x2x1
jax: 0.10.0
libtpu: 0.0.40
codegen_flags: <defaults>
</compile_context>

<pallas_src>
import functools

import jax
import jax.numpy as jnp
from jax.experimental import pallas as pl
from jax.experimental.pallas import tpu as pltpu

_LANES = 128
_SUBLANES = 8
_LOG_CLAMP = -100.0             # PyTorch BCELoss clamps log terms at -100


def _round_up(x, m):
    return ((x + m - 1) // m) * m


def _device_defaults():
    """(block_rows, num_slices, use_mxu_fold) tuned per TPU generation."""
    try:
        kind = jax.devices()[0].device_kind.lower()
    except Exception:
        kind = ""
    if "v7" in kind:
        # 2 TensorCores, 3.2 TB/s HBM -> VALU-limited: big blocks, megacore
        # split, MXU-offloaded fold.
        return 8192, 2, True
    if "v6" in kind:
        # 1 TC, 32 MiB default scoped VMEM -> 8192 rows (16 MiB total) fits.
        return 8192, 1, False
    # v5e / v5p / unknown: stay under the 16 MiB default scoped-VMEM limit.
    return 4096, 1, False


def _balanced_bce_kernel(x_ref, t_ref, out_ref, *, pivot, rows, n_blocks,
                         block_rows, steps_per_slice, use_mxu_fold):
    i = pl.program_id(0)            # slice (one per TensorCore on v7x)
    j = pl.program_id(1)            # row-block step within the slice
    blk = i * steps_per_slice + j   # unclamped global block index

    @pl.when(j == 0)
    def _init():
        out_ref[...] = jnp.zeros_like(out_ref)

    x = x_ref[...].astype(jnp.float32)
    t = t_ref[...].astype(jnp.float32)

    # PyTorch BCELoss clamps the log terms at -100.  Accumulate the
    # sign-flipped value nb = t*(log x - log(1-x)) + log(1-x)  ( == -bce );
    # the negation happens once in the JAX glue.
    log_x = jnp.maximum(jnp.log(x), _LOG_CLAMP)
    log_1mx = jnp.maximum(jnp.log(1.0 - x), _LOG_CLAMP)
    nb = t * (log_x - log_1mx) + log_1mx
    pos_mask = t > pivot

    if use_mxu_fold:
        # v7x: VALU is the binding slot; do the (block_rows,128)->(8,128)
        # fold on the otherwise-idle MXU.  Row 0 of the selector is ones,
        # rows 1..7 zeros, so the folded slab sums to the true total.
        sel = (jax.lax.broadcasted_iota(
            jnp.int32, (_SUBLANES, block_rows), 0) == 0).astype(jnp.float32)

        def fold(v):
            return jnp.dot(sel, v, preferred_element_type=jnp.float32)
    else:
        # Pure vreg-wise VPU adds (reshape is a no-op on the (8,128) tiling).
        def fold(v):
            return jnp.sum(
                v.reshape(block_rows // _SUBLANES, _SUBLANES, _LANES), axis=0)

    # Fast path: every block strictly before the last real block is fully
    # covered by real (or zero-padded, hence neutral) data -> no mask work.
    @pl.when(blk < n_blocks - 1)
    def _interior():
        out_ref[0, 0] += fold(nb)                                 # -sum(bce)
        out_ref[0, 1] += fold(jnp.where(pos_mask, nb, 0.0))       # -sum(bce|pos)
        out_ref[0, 2] += fold(pos_mask.astype(jnp.float32))       # count(pos)

    # Tail path: the (possibly partial) last block and, on v7x with an odd
    # block count, the clamped duplicate block.  Rows past `rows` hold stale
    # VMEM garbage; a row-granular select zeroes them (NaNs from log(garbage)
    # do not propagate through a select).
    @pl.when(blk >= n_blocks - 1)
    def _tail():
        row_ids = blk * block_rows + jax.lax.broadcasted_iota(
            jnp.int32, (block_rows, _LANES), 0)
        valid = row_ids < rows
        pm = pos_mask & valid
        out_ref[0, 0] += fold(jnp.where(valid, nb, 0.0))
        out_ref[0, 1] += fold(jnp.where(pm, nb, 0.0))
        out_ref[0, 2] += fold(pm.astype(jnp.float32))


def balanced_bce_loss(inputs, targets, positive_weight=1.0,
                      negative_weight=1.0, pivot=0.5, block_rows=None):
    """JAX/Pallas equivalent of BalancedBCELoss.forward (returns a scalar)."""
    x_flat = inputs.reshape(-1)          # native dtype; cast happens in-kernel
    t_flat = targets.reshape(-1)
    n = int(x_flat.shape[0])

    default_block_rows, num_slices, use_mxu_fold = _device_defaults()
    if block_rows is None:
        block_rows = default_block_rows
    block_rows = _round_up(max(int(block_rows), _SUBLANES), _SUBLANES)

    # Pad so the row count is a multiple of 8 sublanes (<= 1023 extra
    # elements).  (x=0, t=0) padding contributes exactly 0 to every statistic
    # and is never counted as positive, so no element-granular mask is needed.
    n_pad = _round_up(n, _LANES * _SUBLANES)
    if n_pad != n:
        x_flat = jnp.pad(x_flat, (0, n_pad - n))
        t_flat = jnp.pad(t_flat, (0, n_pad - n))

    rows = n_pad // _LANES
    x2d = x_flat.reshape(rows, _LANES)
    t2d = t_flat.reshape(rows, _LANES)

    block_rows = min(block_rows, rows)
    n_blocks = (rows + block_rows - 1) // block_rows
    steps_per_slice = (n_blocks + num_slices - 1) // num_slices

    if num_slices == 1:
        def in_map(i, j):
            return (j, 0)
    else:
        def in_map(i, j):
            # Clamp keeps the DMA in bounds when a slice overruns n_blocks;
            # the in-kernel row mask (built from the *unclamped* index) zeroes
            # the duplicated block's contribution.
            return (jnp.minimum(i * steps_per_slice + j, n_blocks - 1), 0)

    tile_spec = pl.BlockSpec((block_rows, _LANES), in_map)

    stats = pl.pallas_call(
        functools.partial(_balanced_bce_kernel,
                          pivot=float(pivot), rows=rows, n_blocks=n_blocks,
                          block_rows=block_rows,
                          steps_per_slice=steps_per_slice,
                          use_mxu_fold=use_mxu_fold),
        out_shape=jax.ShapeDtypeStruct(
            (num_slices, 3, _SUBLANES, _LANES), jnp.float32),
        grid=(num_slices, steps_per_slice),
        in_specs=[tile_spec, tile_spec],
        out_specs=pl.BlockSpec((1, 3, _SUBLANES, _LANES),
                               lambda i, j: (i, 0, 0, 0)),
        compiler_params=pltpu.CompilerParams(
            dimension_semantics=("parallel", "arbitrary")),
    )(x2d, t2d)

    # Tiny glue-side reduction of the per-slice (3, 8, 128) partial slabs.
    stats = jnp.sum(stats, axis=(0, 2, 3))           # (3,)
    tot_sum = -stats[0]                               # sum of BCE over all
    pos_sum = -stats[1]                               # sum of BCE over positives
    pos_cnt = stats[2]
    neg_sum = tot_sum - pos_sum
    neg_cnt = jnp.float32(n) - pos_cnt

    # Mean over each masked subset; 0.0 if the subset is empty.
    pos_loss = jnp.where(pos_cnt > 0, pos_sum / jnp.maximum(pos_cnt, 1.0), 0.0)
    neg_loss = jnp.where(neg_cnt > 0, neg_sum / jnp.maximum(neg_cnt, 1.0), 0.0)
    # TODO(synk): empty-class fallback returns a 0-d scalar, not the shape-[1]
    # tensor torch.tensor([0]) that the PyTorch module returns in that branch.
    return pos_loss * positive_weight + neg_loss * negative_weight


def _reference_jax(inputs, targets, positive_weight=1.0, negative_weight=1.0,
                   pivot=0.5):
    x = inputs.reshape(-1).astype(jnp.float32)
    t = targets.reshape(-1).astype(jnp.float32)
    log_x = jnp.maximum(jnp.log(x), _LOG_CLAMP)
    log_1mx = jnp.maximum(jnp.log(1.0 - x), _LOG_CLAMP)
    bce = -(t * log_x + (1.0 - t) * log_1mx)
    pos = t > pivot
    pos_cnt = jnp.sum(pos)
    neg_cnt = jnp.sum(jnp.logical_not(pos))
    pos_loss = jnp.where(
        pos_cnt > 0,
        jnp.sum(jnp.where(pos, bce, 0.0)) / jnp.maximum(pos_cnt, 1), 0.0)
    neg_loss = jnp.where(
        neg_cnt > 0,
        jnp.sum(jnp.where(jnp.logical_not(pos), bce, 0.0))
        / jnp.maximum(neg_cnt, 1), 0.0)
    return pos_loss * positive_weight + neg_loss * negative_weight


if __name__ == "__main__":
    key = jax.random.PRNGKey(0)
    k1, k2, k3, k4 = jax.random.split(key, 4)

    # NCHW like the PyTorch conv convention: (batch=2, channels=4, 16, 16)
    shape = (2, 4, 16, 16)
    inputs = jax.nn.sigmoid(jax.random.normal(k1, shape, dtype=jnp.float32))
    targets = (jax.random.uniform(k2, shape, dtype=jnp.float32) > 0.5).astype(
        jnp.float32)

    loss = jax.block_until_ready(balanced_bce_loss(inputs, targets))
    ref = _reference_jax(inputs, targets)
    assert jnp.allclose(loss, ref, rtol=1e-5, atol=1e-5), (loss, ref)

    # Multi-block path (forces several grid steps so the mask-free interior
    # fast path is exercised alongside the tail path).
    loss_mb = jax.block_until_ready(
        balanced_bce_loss(inputs, targets, positive_weight=2.0,
                          negative_weight=0.5, block_rows=8))
    ref_mb = _reference_jax(inputs, targets, positive_weight=2.0,
                            negative_weight=0.5)
    assert jnp.allclose(loss_mb, ref_mb, rtol=1e-5, atol=1e-5), (loss_mb, ref_mb)

    # Non-lane-aligned element count (exercises the zero-pad + row mask).
    shape2 = (3, 5, 7, 11)
    inputs2 = jax.nn.sigmoid(jax.random.normal(k3, shape2, dtype=jnp.float32))
    targets2 = (jax.random.uniform(k4, shape2, dtype=jnp.float32) > 0.7).astype(
        jnp.float32)
    loss2 = jax.block_until_ready(
        balanced_bce_loss(inputs2, targets2, pivot=0.5))
    ref2 = _reference_jax(inputs2, targets2, pivot=0.5)
    assert jnp.allclose(loss2, ref2, rtol=1e-5, atol=1e-5), (loss2, ref2)

    print("KERNEL_OK")
</pallas_src>

<mosaic_0001>
module attributes {stable_mosaic.version = 11 : i64} {
  func.func @_balanced_bce_kernel(%arg0: i32, %arg1: i32, %arg2: memref<16x128xf32, #tpu.memory_space<vmem>>, %arg3: memref<16x128xf32, #tpu.memory_space<vmem>>, %arg4: memref<1x3x8x128xf32, #tpu.memory_space<vmem>>) attributes {dimension_semantics = [#tpu.dimension_semantics<parallel>, #tpu.dimension_semantics<arbitrary>], iteration_bounds = array<i64: 1, 1>, scalar_prefetch = 0 : i64, scratch_operands = 0 : i64, tpu.core_type = #tpu.core_type<tc>, window_params = [{transform_indices = @transform_0, window_bounds = array<i64: 16, 128>}, {transform_indices = @transform_1, window_bounds = array<i64: 16, 128>}, {transform_indices = @transform_2, window_bounds = array<i64: 1, 3, 8, 128>}]} {
    %c1_i32 = arith.constant 1 : i32
    %0 = arith.muli %arg0, %c1_i32 : i32
    %1 = arith.addi %0, %arg1 : i32
    %c0_i32 = arith.constant 0 : i32
    %2 = arith.cmpi eq, %arg1, %c0_i32 : i32
    %3 = arith.extui %2 : i1 to i32
    %c0_i32_0 = arith.constant 0 : i32
    %4 = arith.cmpi ne, %3, %c0_i32_0 : i32
    scf.if %4 {
      %cst_11 = arith.constant 0.000000e+00 : f32
      %26 = vector.broadcast %cst_11 : f32 to vector<1x3x8x128xf32>
      %c0_12 = arith.constant 0 : index
      %c0_13 = arith.constant 0 : index
      %c0_14 = arith.constant 0 : index
      %c0_15 = arith.constant 0 : index
      %27 = vector.load %arg4[%c0_12, %c0_13, %c0_14, %c0_15] : memref<1x3x8x128xf32, #tpu.memory_space<vmem>>, vector<1x3x8x128xf32>
      tpu.vector_store %arg4[%c0_12, %c0_13, %c0_14, %c0_15], %26 {strides = array<i32>} : memref<1x3x8x128xf32, #tpu.memory_space<vmem>>, vector<1x3x8x128xf32>,
    } else {
    }
    %c0 = arith.constant 0 : index
    %c0_1 = arith.constant 0 : index
    %5 = vector.load %arg2[%c0, %c0_1] : memref<16x128xf32, #tpu.memory_space<vmem>>, vector<16x128xf32>
    %c0_2 = arith.constant 0 : index
    %c0_3 = arith.constant 0 : index
    %6 = vector.load %arg3[%c0_2, %c0_3] : memref<16x128xf32, #tpu.memory_space<vmem>>, vector<16x128xf32>
    %7 = math.log %5 : vector<16x128xf32>
    %cst = arith.constant -1.000000e+02 : f32
    %8 = vector.broadcast %cst : f32 to vector<16x128xf32>
    %9 = arith.maximumf %7, %8 : vector<16x128xf32>
    %cst_4 = arith.constant 1.000000e+00 : f32
    %10 = vector.broadcast %cst_4 : f32 to vector<16x128xf32>
    %11 = arith.subf %10, %5 : vector<16x128xf32>
    %12 = math.log %11 : vector<16x128xf32>
    %cst_5 = arith.constant -1.000000e+02 : f32
    %13 = vector.broadcast %cst_5 : f32 to vector<16x128xf32>
    %14 = arith.maximumf %12, %13 : vector<16x128xf32>
    %15 = arith.subf %9, %14 : vector<16x128xf32>
    %16 = arith.mulf %6, %15 : vector<16x128xf32>
    %17 = arith.addf %16, %14 : vector<16x128xf32>
    %cst_6 = arith.constant 5.000000e-01 : f32
    %18 = vector.broadcast %cst_6 : f32 to vector<16x128xf32>
    %19 = arith.cmpf ogt, %6, %18 : vector<16x128xf32>
    %c0_i32_7 = arith.constant 0 : i32
    %20 = arith.cmpi slt, %1, %c0_i32_7 : i32
    %21 = arith.extui %20 : i1 to i32
    %c0_i32_8 = arith.constant 0 : i32
    %22 = arith.cmpi ne, %21, %c0_i32_8 : i32
    scf.if %22 {
      %c0_11 = arith.constant 0 : index
      %c0_12 = arith.constant 0 : index
      %c0_13 = arith.constant 0 : index
      %c0_14 = arith.constant 0 : index
      %26 = vector.load %arg4[%c0_11, %c0_12, %c0_13, %c0_14] : memref<1x3x8x128xf32, #tpu.memory_space<vmem>>, vector<1x1x8x128xf32>
      %27 = vector.shape_cast %26 : vector<1x1x8x128xf32> to vector<8x128xf32>
      %28 = vector.shape_cast %17 : vector<16x128xf32> to vector<2x8x128xf32>
      %cst_15 = arith.constant dense<0.000000e+00> : vector<8x128xf32>
      %29 = vector.multi_reduction <add>, %28, %cst_15 [0] : vector<2x8x128xf32> to vector<8x128xf32>
      %30 = arith.addf %27, %29 : vector<8x128xf32>
      %c0_16 = arith.constant 0 : index
      %c0_17 = arith.constant 0 : index
      %c0_18 = arith.constant 0 : index
      %c0_19 = arith.constant 0 : index
      %31 = vector.load %arg4[%c0_16, %c0_17, %c0_18, %c0_19] : memref<1x3x8x128xf32, #tpu.memory_space<vmem>>, vector<1x1x8x128xf32>
      %32 = vector.shape_cast %31 : vector<1x1x8x128xf32> to vector<8x128xf32>
      %33 = vector.shape_cast %30 : vector<8x128xf32> to vector<1x1x8x128xf32>
      tpu.vector_store %arg4[%c0_16, %c0_17, %c0_18, %c0_19], %33 {strides = array<i32>} : memref<1x3x8x128xf32, #tpu.memory_space<vmem>>, vector<1x1x8x128xf32>,
      %c0_20 = arith.constant 0 : index
      %c1 = arith.constant 1 : index
      %c0_21 = arith.constant 0 : index
      %c0_22 = arith.constant 0 : index
      %34 = vector.load %arg4[%c0_20, %c1, %c0_21, %c0_22] : memref<1x3x8x128xf32, #tpu.memory_space<vmem>>, vector<1x1x8x128xf32>
      %35 = vector.shape_cast %34 : vector<1x1x8x128xf32> to vector<8x128xf32>
      %cst_23 = arith.constant 0.000000e+00 : f32
      %36 = vector.broadcast %cst_23 : f32 to vector<16x128xf32>
      %37 = arith.select %19, %17, %36 : vector<16x128xi1>, vector<16x128xf32>
      %38 = vector.shape_cast %37 : vector<16x128xf32> to vector<2x8x128xf32>
      %cst_24 = arith.constant dense<0.000000e+00> : vector<8x128xf32>
      %39 = vector.multi_reduction <add>, %38, %cst_24 [0] : vector<2x8x128xf32> to vector<8x128xf32>
      %40 = arith.addf %35, %39 : vector<8x128xf32>
      %c0_25 = arith.constant 0 : index
      %c1_26 = arith.constant 1 : index
      %c0_27 = arith.constant 0 : index
      %c0_28 = arith.constant 0 : index
      %41 = vector.load %arg4[%c0_25, %c1_26, %c0_27, %c0_28] : memref<1x3x8x128xf32, #tpu.memory_space<vmem>>, vector<1x1x8x128xf32>
      %42 = vector.shape_cast %41 : vector<1x1x8x128xf32> to vector<8x128xf32>
      %43 = vector.shape_cast %40 : vector<8x128xf32> to vector<1x1x8x128xf32>
      tpu.vector_store %arg4[%c0_25, %c1_26, %c0_27, %c0_28], %43 {strides = array<i32>} : memref<1x3x8x128xf32, #tpu.memory_space<vmem>>, vector<1x1x8x128xf32>,
      %c0_29 = arith.constant 0 : index
      %c2 = arith.constant 2 : index
      %c0_30 = arith.constant 0 : index
      %c0_31 = arith.constant 0 : index
      %44 = vector.load %arg4[%c0_29, %c2, %c0_30, %c0_31] : memref<1x3x8x128xf32, #tpu.memory_space<vmem>>, vector<1x1x8x128xf32>
      %45 = vector.shape_cast %44 : vector<1x1x8x128xf32> to vector<8x128xf32>
      %46 = arith.extui %19 : vector<16x128xi1> to vector<16x128xi32>
      %47 = arith.sitofp %46 : vector<16x128xi32> to vector<16x128xf32>
      %48 = vector.shape_cast %47 : vector<16x128xf32> to vector<2x8x128xf32>
      %cst_32 = arith.constant dense<0.000000e+00> : vector<8x128xf32>
      %49 = vector.multi_reduction <add>, %48, %cst_32 [0] : vector<2x8x128xf32> to vector<8x128xf32>
      %50 = arith.addf %45, %49 : vector<8x128xf32>
      %c0_33 = arith.constant 0 : index
      %c2_34 = arith.constant 2 : index
      %c0_35 = arith.constant 0 : index
      %c0_36 = arith.constant 0 : index
      %51 = vector.load %arg4[%c0_33, %c2_34, %c0_35, %c0_36] : memref<1x3x8x128xf32, #tpu.memory_space<vmem>>, vector<1x1x8x128xf32>
      %52 = vector.shape_cast %51 : vector<1x1x8x128xf32> to vector<8x128xf32>
      %53 = vector.shape_cast %50 : vector<8x128xf32> to vector<1x1x8x128xf32>
      tpu.vector_store %arg4[%c0_33, %c2_34, %c0_35, %c0_36], %53 {strides = array<i32>} : memref<1x3x8x128xf32, #tpu.memory_space<vmem>>, vector<1x1x8x128xf32>,
    } else {
    }
    %c0_i32_9 = arith.constant 0 : i32
    %23 = arith.cmpi sge, %1, %c0_i32_9 : i32
    %24 = arith.extui %23 : i1 to i32
    %c0_i32_10 = arith.constant 0 : i32
    %25 = arith.cmpi ne, %24, %c0_i32_10 : i32
    scf.if %25 {
      %c16_i32 = arith.constant 16 : i32
      %26 = arith.muli %1, %c16_i32 : i32
      %27 = tpu.iota {dimensions = array<i32: 0>} : vector<16x128xi32>
      %28 = vector.broadcast %26 : i32 to vector<16x128xi32>
      %29 = arith.addi %28, %27 : vector<16x128xi32>
      %c16_i32_11 = arith.constant 16 : i32
      %30 = vector.broadcast %c16_i32_11 : i32 to vector<16x128xi32>
      %31 = arith.cmpi slt, %29, %30 : vector<16x128xi32>
      %32 = arith.andi %19, %31 : vector<16x128xi1>
      %c0_12 = arith.constant 0 : index
      %c0_13 = arith.constant 0 : index
      %c0_14 = arith.constant 0 : index
      %c0_15 = arith.constant 0 : index
      %33 = vector.load %arg4[%c0_12, %c0_13, %c0_14, %c0_15] : memref<1x3x8x128xf32, #tpu.memory_space<vmem>>, vector<1x1x8x128xf32>
      %34 = vector.shape_cast %33 : vector<1x1x8x128xf32> to vector<8x128xf32>
      %cst_16 = arith.constant 0.000000e+00 : f32
      %35 = vector.broadcast %cst_16 : f32 to vector<16x128xf32>
      %36 = arith.select %31, %17, %35 : vector<16x128xi1>, vector<16x128xf32>
      %37 = vector.shape_cast %36 : vector<16x128xf32> to vector<2x8x128xf32>
      %cst_17 = arith.constant dense<0.000000e+00> : vector<8x128xf32>
      %38 = vector.multi_reduction <add>, %37, %cst_17 [0] : vector<2x8x128xf32> to vector<8x128xf32>
      %39 = arith.addf %34, %38 : vector<8x128xf32>
      %c0_18 = arith.constant 0 : index
      %c0_19 = arith.constant 0 : index
      %c0_20 = arith.constant 0 : index
      %c0_21 = arith.constant 0 : index
      %40 = vector.load %arg4[%c0_18, %c0_19, %c0_20, %c0_21] : memref<1x3x8x128xf32, #tpu.memory_space<vmem>>, vector<1x1x8x128xf32>
      %41 = vector.shape_cast %40 : vector<1x1x8x128xf32> to vector<8x128xf32>
      %42 = vector.shape_cast %39 : vector<8x128xf32> to vector<1x1x8x128xf32>
      tpu.vector_store %arg4[%c0_18, %c0_19, %c0_20, %c0_21], %42 {strides = array<i32>} : memref<1x3x8x128xf32, #tpu.memory_space<vmem>>, vector<1x1x8x128xf32>,
      %c0_22 = arith.constant 0 : index
      %c1 = arith.constant 1 : index
      %c0_23 = arith.constant 0 : index
      %c0_24 = arith.constant 0 : index
      %43 = vector.load %arg4[%c0_22, %c1, %c0_23, %c0_24] : memref<1x3x8x128xf32, #tpu.memory_space<vmem>>, vector<1x1x8x128xf32>
      %44 = vector.shape_cast %43 : vector<1x1x8x128xf32> to vector<8x128xf32>
      %cst_25 = arith.constant 0.000000e+00 : f32
      %45 = vector.broadcast %cst_25 : f32 to vector<16x128xf32>
      %46 = arith.select %32, %17, %45 : vector<16x128xi1>, vector<16x128xf32>
      %47 = vector.shape_cast %46 : vector<16x128xf32> to vector<2x8x128xf32>
      %cst_26 = arith.constant dense<0.000000e+00> : vector<8x128xf32>
      %48 = vector.multi_reduction <add>, %47, %cst_26 [0] : vector<2x8x128xf32> to vector<8x128xf32>
      %49 = arith.addf %44, %48 : vector<8x128xf32>
      %c0_27 = arith.constant 0 : index
      %c1_28 = arith.constant 1 : index
      %c0_29 = arith.constant 0 : index
      %c0_30 = arith.constant 0 : index
      %50 = vector.load %arg4[%c0_27, %c1_28, %c0_29, %c0_30] : memref<1x3x8x128xf32, #tpu.memory_space<vmem>>, vector<1x1x8x128xf32>
      %51 = vector.shape_cast %50 : vector<1x1x8x128xf32> to vector<8x128xf32>
      %52 = vector.shape_cast %49 : vector<8x128xf32> to vector<1x1x8x128xf32>
      tpu.vector_store %arg4[%c0_27, %c1_28, %c0_29, %c0_30], %52 {strides = array<i32>} : memref<1x3x8x128xf32, #tpu.memory_space<vmem>>, vector<1x1x8x128xf32>,
      %c0_31 = arith.constant 0 : index
      %c2 = arith.constant 2 : index
      %c0_32 = arith.constant 0 : index
      %c0_33 = arith.constant 0 : index
      %53 = vector.load %arg4[%c0_31, %c2, %c0_32, %c0_33] : memref<1x3x8x128xf32, #tpu.memory_space<vmem>>, vector<1x1x8x128xf32>
      %54 = vector.shape_cast %53 : vector<1x1x8x128xf32> to vector<8x128xf32>
      %55 = arith.extui %32 : vector<16x128xi1> to vector<16x128xi32>
      %56 = arith.sitofp %55 : vector<16x128xi32> to vector<16x128xf32>
      %57 = vector.shape_cast %56 : vector<16x128xf32> to vector<2x8x128xf32>
      %cst_34 = arith.constant dense<0.000000e+00> : vector<8x128xf32>
      %58 = vector.multi_reduction <add>, %57, %cst_34 [0] : vector<2x8x128xf32> to vector<8x128xf32>
      %59 = arith.addf %54, %58 : vector<8x128xf32>
      %c0_35 = arith.constant 0 : index
      %c2_36 = arith.constant 2 : index
      %c0_37 = arith.constant 0 : index
      %c0_38 = arith.constant 0 : index
      %60 = vector.load %arg4[%c0_35, %c2_36, %c0_37, %c0_38] : memref<1x3x8x128xf32, #tpu.memory_space<vmem>>, vector<1x1x8x128xf32>
      %61 = vector.shape_cast %60 : vector<1x1x8x128xf32> to vector<8x128xf32>
      %62 = vector.shape_cast %59 : vector<8x128xf32> to vector<1x1x8x128xf32>
      tpu.vector_store %arg4[%c0_35, %c2_36, %c0_37, %c0_38], %62 {strides = array<i32>} : memref<1x3x8x128xf32, #tpu.memory_space<vmem>>, vector<1x1x8x128xf32>,
    } else {
    }
    return
  }
  func.func @transform_0(%arg0: i32, %arg1: i32) -> (i32, i32) {
    %c0_i32 = arith.constant 0 : i32
    %c0_i32_0 = arith.constant 0 : i32
    return %arg1, %c0_i32 : i32, i32
  }
  func.func @transform_1(%arg0: i32, %arg1: i32) -> (i32, i32) {
    %c0_i32 = arith.constant 0 : i32
    %c0_i32_0 = arith.constant 0 : i32
    return %arg1, %c0_i32 : i32, i32
  }
  func.func @transform_2(%arg0: i32, %arg1: i32) -> (i32, i32, i32, i32) {
    %c0_i32 = arith.constant 0 : i32
    %c0_i32_0 = arith.constant 0 : i32
    %c0_i32_1 = arith.constant 0 : i32
    %c0_i32_2 = arith.constant 0 : i32
    return %arg0, %c0_i32, %c0_i32_0, %c0_i32_1 : i32, i32, i32, i32
  }
}

</mosaic_0001>

<bundles_post_ra>
// kernel: tpu_custom_call.1
= control target key start
LH: loop header
LB: loop body
LE: loop exit
PB: predicated region body
PF: predicated region fallthrough
CT: control target
= control target key end

     0   :  { %7 = vsyncpa [#allocation3], 0  ;;  %s280_s0 = inlined_call_operand.hbm [shape: f32[16,128], index: 0, kind: input, shape index: {}]   ;;  %s281_s1 = inlined_call_operand.hbm [shape: f32[16,128], index: 1, kind: input, shape index: {}]   ;;  %s282_s2 = inlined_call_operand.hbm [shape: f32[1,3,8,128], index: 2, kind: output, shape index: {}]  }
   0x1   :  { %8 = vsyncpa [#allocation6], 0 }
   0x2   :  { %9 = vsyncpa [#allocation4], 0  ;;  %s237_s9 = smov [#allocation2]  }
   0x3   :  { %s15_s10 = sshll.u32 %s237_s9, 4  ;;  %s16_s10 = int_to_ptr.vmem [resolvable:$true] %s15_s10 }
   0x4   :  { %s179_s11 = scalar_lea.vmem %s16_s10, 256  ;;  %p184_p1 = scmp.lt.s32.totalorder %s16_s10, %s16_s10 }
   0x5   :  { %p180_p0 = scmp.ne.s32.totalorder %s16_s10, %s179_s11  ;;  %p185_p2 = scmp.lt.s32.totalorder %s179_s11, %s179_s11 }
   0x7   :  { %p186_p3 = por %p185_p2, %p184_p1 }
   0x9   :  { %p187_p4 = pnand %p186_p3, %p180_p0 }
   0xb   :  { %190 = shalt.err (!%p187_p4)
}
   0xc   :  { %s238_s12 = smov 128   ;;  %s239_s13 = smov 8  }
   0xd   :  { %21 = dma.hbm_to_vmem [thread:$0]  %s280_s0, 256, %s16_s10, [#allocation3], %s238_s12, %s238_s12, %s239_s13  }
   0xe   :  { %s240_s16 = smov [#allocation5]  }
   0xf   :  { %s27_s17 = sshll.u32 %s240_s16, 4  ;;  %s28_s17 = int_to_ptr.vmem [resolvable:$true] %s27_s17 }
  0x10   :  { %s199_s18 = scalar_lea.vmem %s28_s17, 256  ;;  %p204_p6 = scmp.lt.s32.totalorder %s28_s17, %s28_s17 }
  0x11   :  { %p200_p5 = scmp.ne.s32.totalorder %s28_s17, %s199_s18  ;;  %p205_p7 = scmp.lt.s32.totalorder %s199_s18, %s199_s18 }
  0x13   :  { %p206_p8 = por %p205_p7, %p204_p6 }
  0x15   :  { %p207_p9 = pnand %p206_p8, %p200_p5 }
  0x17   :  { %210 = shalt.err (!%p207_p9)
}
  0x18   :  { %33 = dma.hbm_to_vmem [thread:$0]  %s281_s1, 256, %s28_s17, [#allocation6], %s238_s12, %s238_s12, %s239_s13  }
  0x19   :  { %231 = dma.done.wait [#allocation3], 256  }
  0x1a   :  { %232 = vsyncadd [#allocation3], 4294967040 }
  0x1b   :  { %233 = dma.done.wait [#allocation6], 256  }
  0x1c   :  { %234 = vsyncadd [#allocation6], 4294967040  ;;  %v48_v0 = vld [vmem:[#allocation2] sm:$0xff]  ;;  %v49_v1 = vld [vmem:[#allocation2 + $0x8] sm:$0xff]  ;;  %v241_v6 = vmov 0.0   ;;  %s242_s0 = smov [#allocation7]  }
  0x1d   :  { %v50_v2 = vld [vmem:[#allocation5] sm:$0xff]  ;;  %v51_v3 = vld [vmem:[#allocation5 + $0x8] sm:$0xff]  ;;  %163 = vlog2.f32 %v48_v0  ;;  %v58_v4 = vsub.f32 1.0, %v48_v0  ;;  %v59_v5 = vsub.f32 1.0, %v49_v1  ;;  %s140_s1 = sshll.u32 %s242_s0, 4  ;;  %s141_s1 = int_to_ptr.vmem [resolvable:$true] %s140_s1 }
  0x1e   :  { %vm72_vm0 = vcmp.gt.f32.partialorder %v50_v2, 0.5  ;;  %165 = vlog2.f32 %v49_v1  ;;  %vm73_vm1 = vcmp.gt.f32.partialorder %v51_v3, 0.5  ;;  %s211_s21 = scalar_lea.vmem %s141_s1, 384  ;;  %p216_p11 = scmp.lt.s32.totalorder %s141_s1, %s141_s1 }
  0x1f   :  { %v155_v7 = vsel %vm72_vm0, 1.0, %v241_v6  ;;  %167 = vlog2.f32 %v58_v4  ;;  %v156_v8 = vsel %vm73_vm1, 1.0, %v241_v6  ;;  %p212_p10 = scmp.ne.s32.totalorder %s141_s1, %s211_s21  ;;  %p217_p12 = scmp.lt.s32.totalorder %s211_s21, %s211_s21 }
  0x20   :  { %169 = vlog2.f32 %v59_v5  ;;  %v132_v9 = vadd.f32 %v156_v8, %v155_v7 }
  0x21   :  { %p218_p13 = por %p217_p12, %p216_p11 }
  0x22   :  { %134 = vst [vmem:[#allocation7 + $0x10] sm:$0xff] %v132_v9 }
  0x23   :  { %p219_p0 = pnand %p218_p13, %p212_p10 }
  0x2a   :  { %v164_v10 = vpop.eup %163 }
  0x2b   :  { %v166_v11 = vpop.eup %165  ;;  %v53_v12 = vmul.f32 0.6931472, %v164_v10 }
  0x2c   :  { %v168_v13 = vpop.eup %167  ;;  %v55_v14 = vmul.f32 0.6931472, %v166_v11 }
  0x2d   :  { %v170_v15 = vpop.eup %169  ;;  %v56_v16 = vmax.f32 %v53_v12, -100.0  ;;  %v61_v17 = vmul.f32 0.6931472, %v168_v13 }
  0x2e   :  { %v57_v18 = vmax.f32 %v55_v14, -100.0  ;;  %v63_v19 = vmul.f32 0.6931472, %v170_v15 }
  0x2f   :  { %v64_v20 = vmax.f32 %v61_v17, -100.0 }
  0x30   :  { %v65_v21 = vmax.f32 %v63_v19, -100.0 }
  0x31   :  { %v66_v22 = vsub.f32 %v56_v16, %v64_v20 }
  0x32   :  { %v67_v23 = vsub.f32 %v57_v18, %v65_v21 }
  0x33   :  { %v68_v24 = vmul.f32 %v66_v22, %v50_v2 }
  0x34   :  { %v69_v25 = vmul.f32 %v67_v23, %v51_v3 }
  0x35   :  { %v70_v26 = vadd.f32 %v68_v24, %v64_v20 }
  0x36   :  { %v71_v27 = vadd.f32 %v69_v25, %v65_v21 }
  0x37   :  { %v121_v28 = vsel %vm72_vm0, %v70_v26, 0.0 }
  0x38   :  { %v116_v29 = vadd.f32 %v71_v27, %v70_v26  ;;  %v122_v30 = vsel %vm73_vm1, %v71_v27, 0.0 }
  0x39   :  { %v123_v31 = vadd.f32 %v122_v30, %v121_v28 }
  0x3a   :  { %118 = vst [vmem:[#allocation7] sm:$0xff] %v116_v29 }
  0x3b   :  { %125 = vst [vmem:[#allocation7 + $0x8] sm:$0xff] %v123_v31 }
  0x3c   :  { %222 = shalt.err (!%p219_p0)
}
  0x3d   :  { %146 = dma.vmem_to_hbm [thread:$0]  %s141_s1, 384, %s282_s2, [#allocation4], %s238_s12, %s238_s12, %s239_s13  }
  0x3e   :  { %235 = dma.done.wait [#allocation4], 384  }
  0x3f   :  { %236 = vsyncadd [#allocation4], 4294966912 }
  0x40   :  { %150 = vsyncpa [#allocation3], 1 }
  0x41   :  { %151 = vsyncpa [#allocation6], 1 }
  0x42   :  { %152 = vsyncpa [#allocation4], 1 }

</bundles_post_ra>
